<compile_context>
chip_gen: v5e
topology: v5e:2x2
jax: 0.10.0
libtpu: 0.0.40
codegen_flags: <defaults>
</compile_context>

<pallas_src>
import functools
import math

import jax
import jax.numpy as jnp
from jax.experimental import pallas as pl
from jax.experimental.pallas import tpu as pltpu


# --------------------------------------------------------------------------
# kernel
# --------------------------------------------------------------------------
def mha_kernel(x_ref, mask_ref, wqkv_ref, bqkv_ref, wo_ref, aux_ref,
               out_ref, ctx_ref, *, num_heads, dim_out, seq_len, batch_block):
    H, D, S, BB = num_heads, dim_out, seq_len, batch_block
    HD = H * D
    NEG = jnp.float32(-1e9)

    # One fused, lane-dense QKV projection for all heads / all rows in the
    # block.  bf16 MXU operands, f32 accumulation; 1/sqrt(S) is already folded
    # into the Q columns of wqkv/bqkv by the wrapper.
    x = x_ref[...].astype(jnp.bfloat16)                       # (BB*S, dim_inp)
    qkv = jnp.dot(x, wqkv_ref[...],
                  preferred_element_type=jnp.float32) + bqkv_ref[...]  # (BB*S, 3HD) f32

    for b in range(BB):                   # static unroll; BB is small per block
        # additive mask bias built in-kernel from the int8 mask (0/1 -> 0/-1e9)
        bias = mask_ref[b].astype(jnp.float32) * NEG          # (S, S)
        qkv_b = qkv[b * S:(b + 1) * S, :]                     # static slice

        for h in range(H):                # static unroll over heads
            q = qkv_b[:, h * D:(h + 1) * D].astype(jnp.bfloat16)
            k = qkv_b[:, HD + h * D:HD + (h + 1) * D].astype(jnp.bfloat16)
            v = qkv_b[:, 2 * HD + h * D:2 * HD + (h + 1) * D].astype(jnp.bfloat16)

            # q @ k^T as a transposed-RHS contraction (MXU, f32 accumulate)
            s = jax.lax.dot_general(q, k, (((1,), (1,)), ((), ())),
                                    preferred_element_type=jnp.float32)
            s = s + bias                  # scale already folded into Wq/bq

            # numerically stable softmax in f32 with an EXACT divide
            # (approx reciprocal removed: it caused the reference mismatch)
            s = s - jnp.max(s, axis=-1, keepdims=True)
            e = jnp.exp(s)
            attn = e / jnp.sum(e, axis=-1, keepdims=True)

            ctx = jnp.dot(attn.astype(jnp.bfloat16), v,
                          preferred_element_type=jnp.float32)          # (S, D)
            # stage the per-head context into VMEM scratch (the "concat");
            # no cross-iteration value accumulator is kept live
            ctx_ref[b * S:(b + 1) * S, h * D:(h + 1) * D] = ctx.astype(ctx_ref.dtype)

    bo = aux_ref[0:1, :]      # output-linear bias
    gamma = aux_ref[1:2, :]   # LayerNorm weight
    beta = aux_ref[2:3, :]    # LayerNorm bias

    # ONE deep output projection for the whole block: K = H*D on the MXU
    # instead of H shallow K=D matmuls.
    y = jnp.dot(ctx_ref[...], wo_ref[...],
                preferred_element_type=jnp.float32) + bo               # (BB*S, dim_inp)

    # LayerNorm over the last dim (eps=1e-5, biased variance == nn.LayerNorm)
    mean = jnp.mean(y, axis=-1, keepdims=True)
    var = jnp.mean((y - mean) ** 2, axis=-1, keepdims=True)
    out_ref[...] = ((y - mean) * jax.lax.rsqrt(var + 1e-5) * gamma + beta
                    ).astype(out_ref.dtype)


# --------------------------------------------------------------------------
# parameter fusion (one-time weight transform, not an activation pre-scale)
# --------------------------------------------------------------------------
def _fuse_params(params, num_heads, dim_out, dim_inp, seq_len):
    """Fold per-head Q/K/V weights into one bf16 matrix, fold the 1/sqrt(S)
    score scale into the Q columns, and consolidate the small f32 vectors."""
    wq, bq, wk, bk, wv, bv, wo, bo, gamma, beta = params
    H, D = num_heads, dim_out
    inv_scale = jnp.float32(1.0 / math.sqrt(float(seq_len)))  # PyTorch: query.size(1)**0.5

    def fold_w(w):   # (H, dim_inp, D) -> (dim_inp, H*D)
        return jnp.transpose(w, (1, 0, 2)).reshape(dim_inp, H * D)

    def fold_b(b):   # (H, 1, D) -> (1, H*D)
        return b[:, 0, :].reshape(1, H * D)

    # scale fold is done in f32 *before* the bf16 cast
    wqkv = jnp.concatenate([fold_w(wq) * inv_scale, fold_w(wk), fold_w(wv)], axis=1)
    bqkv = jnp.concatenate([fold_b(bq) * inv_scale, fold_b(bk), fold_b(bv)], axis=1)
    aux = jnp.concatenate([bo, gamma, beta], axis=0)            # (3, dim_inp) f32
    return (wqkv.astype(jnp.bfloat16),        # MXU operand
            bqkv.astype(jnp.float32),         # added to the f32 accumulator
            wo.astype(jnp.bfloat16),          # MXU operand, (H*D, dim_inp)
            aux.astype(jnp.float32))


# --------------------------------------------------------------------------
# wrapper
# --------------------------------------------------------------------------
def multi_head_attention(x, mask, params, *, num_heads, dim_out, batch_block=None):
    """x: (B, S, dim_inp); mask: (B, S, S), nonzero/True = masked out."""
    B, S, dim_inp = x.shape
    H, D = num_heads, dim_out

    if batch_block is None:
        # default: 2 grid steps so the "parallel" axis shards across v7x's two
        # TensorCores; negligible (~0.35us) extra cost on single-TC v5e/v6e.
        batch_block = B // 2 if (B % 2 == 0 and B >= 2) else B
    assert B % batch_block == 0
    nb = B // batch_block
    BBS = batch_block * S

    wqkv, bqkv, wo, aux = _fuse_params(params, H, D, dim_inp, S)

    x2d = x.reshape(B * S, dim_inp)                       # f32; cast to bf16 in-kernel
    mask_i8 = (mask != 0).astype(jnp.int8)                # 1 byte/elem of mask DMA

    kernel = functools.partial(mha_kernel, num_heads=H, dim_out=D,
                               seq_len=S, batch_block=batch_block)

    # ---- VMEM budget (v7x: 64 MiB physical / 32 MiB scoped default) --------
    block_bytes = (
        2 * (BBS * dim_inp * 4                 # x block (double-buffered)
             + batch_block * S * S * 1         # int8 mask block
             + wqkv.size * 2 + bqkv.size * 4 + wo.size * 2 + aux.size * 4)
        + 2 * BBS * dim_inp * 4                # out block (double-buffered)
        + BBS * 3 * H * D * 4                  # live qkv f32 value
        + BBS * H * D * 2                      # ctx scratch (bf16)
    )
    vmem_limit = None
    if block_bytes > 32 * 1024 * 1024:         # only raise above the default
        vmem_limit = min(int(block_bytes * 3 // 2), 56 * 1024 * 1024)

    flops = (2 * B * S * dim_inp * 3 * H * D       # fused QKV projection
             + 2 * B * H * S * S * D * 2           # scores + context
             + 2 * B * S * H * D * dim_inp)        # output projection
    cost = pl.CostEstimate(
        flops=int(flops),
        transcendentals=int(B * H * S * S),        # exp in softmax
        bytes_accessed=int(x2d.size * 4 + mask_i8.size + wqkv.size * 2 +
                           bqkv.size * 4 + wo.size * 2 + aux.size * 4 +
                           B * S * dim_inp * 4))

    grid_spec = pltpu.PrefetchScalarGridSpec(
        num_scalar_prefetch=0,
        grid=(nb,),
        in_specs=[
            pl.BlockSpec((BBS, dim_inp), lambda i: (i, 0)),           # x (batch folded)
            pl.BlockSpec((batch_block, S, S), lambda i: (i, 0, 0)),   # int8 mask
            pl.BlockSpec((dim_inp, 3 * H * D), lambda i: (0, 0)),     # fused Wqkv (bf16)
            pl.BlockSpec((1, 3 * H * D), lambda i: (0, 0)),           # fused bqkv (f32)
            pl.BlockSpec((H * D, dim_inp), lambda i: (0, 0)),         # Wo (bf16)
            pl.BlockSpec((3, dim_inp), lambda i: (0, 0)),             # [bo; gamma; beta]
        ],
        out_specs=pl.BlockSpec((BBS, dim_inp), lambda i: (i, 0)),
        scratch_shapes=[pltpu.VMEM((BBS, H * D), jnp.bfloat16)],      # staged ctx
    )

    out2d = pl.pallas_call(
        kernel,
        out_shape=jax.ShapeDtypeStruct((B * S, dim_inp), jnp.float32),
        grid_spec=grid_spec,
        compiler_params=pltpu.CompilerParams(
            dimension_semantics=("parallel",),
            vmem_limit_bytes=vmem_limit),
        cost_estimate=cost,
    )(x2d, mask_i8, wqkv, bqkv, wo, aux)

    return out2d.reshape(B, S, dim_inp)


# --------------------------------------------------------------------------
# references
# --------------------------------------------------------------------------
def reference_f32(x, mask_bool, params, *, num_heads, dim_out):
    """Pure-f32, PyTorch-faithful reproduction of the forward pass."""
    wq, bq, wk, bk, wv, bv, wo, bo, gamma, beta = params
    B, S, _ = x.shape
    scale = math.sqrt(float(S))     # PyTorch: query.size(1) ** 0.5 == sqrt(seq_len)
    heads = []
    for h in range(num_heads):
        q = x @ wq[h] + bq[h]
        k = x @ wk[h] + bk[h]
        v = x @ wv[h] + bv[h]
        s = jnp.einsum("bqd,bkd->bqk", q, k) / scale
        s = jnp.where(mask_bool, -1e9, s)
        a = jax.nn.softmax(s, axis=-1)
        heads.append(jnp.einsum("bqk,bkd->bqd", a, v))
    ctx = jnp.concatenate(heads, axis=-1)
    y = ctx @ wo + bo
    mean = jnp.mean(y, axis=-1, keepdims=True)
    var = jnp.mean((y - mean) ** 2, axis=-1, keepdims=True)
    return (y - mean) * jax.lax.rsqrt(var + 1e-5) * gamma + beta


def reference_mixed(x, mask_bool, fused, *, num_heads, dim_out):
    """Plain-JAX model of the kernel arithmetic (same fused/scale-folded
    params, same bf16 MXU-operand / f32-accumulation points)."""
    wqkv_bf16, bqkv, wo_bf16, aux = fused
    bo, gamma, beta = aux[0:1], aux[1:2], aux[2:3]
    H, D = num_heads, dim_out
    B, S, dim_inp = x.shape

    xb = x.reshape(B * S, dim_inp).astype(jnp.bfloat16)
    qkv = jnp.dot(xb, wqkv_bf16, preferred_element_type=jnp.float32) + bqkv
    qkv = qkv.reshape(B, S, 3, H, D)
    q = qkv[:, :, 0].astype(jnp.bfloat16)
    k = qkv[:, :, 1].astype(jnp.bfloat16)
    v = qkv[:, :, 2].astype(jnp.bfloat16)

    s = jnp.einsum("bqhd,bkhd->bhqk", q, k, preferred_element_type=jnp.float32)
    bias = mask_bool.astype(jnp.float32) * jnp.float32(-1e9)
    s = s + bias[:, None, :, :]
    a = jax.nn.softmax(s, axis=-1)

    ctx = jnp.einsum("bhqk,bkhd->bqhd", a.astype(jnp.bfloat16), v,
                     preferred_element_type=jnp.float32)
    ctx = ctx.reshape(B * S, H * D).astype(jnp.bfloat16)
    y = jnp.dot(ctx, wo_bf16, preferred_element_type=jnp.float32) + bo
    mean = jnp.mean(y, axis=-1, keepdims=True)
    var = jnp.mean((y - mean) ** 2, axis=-1, keepdims=True)
    out = (y - mean) * jax.lax.rsqrt(var + 1e-5) * gamma + beta
    return out.reshape(B, S, dim_inp)


# --------------------------------------------------------------------------
# demo / validation
# --------------------------------------------------------------------------
if __name__ == "__main__":
    B, S, dim_inp, dim_out, H = 2, 8, 32, 16, 4

    key = jax.random.PRNGKey(0)
    keys = jax.random.split(key, 9)

    # deterministic synthetic parameters (shapes mirror nn.Linear / nn.LayerNorm)
    wq = 0.1 * jax.random.normal(keys[0], (H, dim_inp, dim_out), jnp.float32)
    bq = 0.1 * jax.random.normal(keys[1], (H, 1, dim_out), jnp.float32)
    wk = 0.1 * jax.random.normal(keys[2], (H, dim_inp, dim_out), jnp.float32)
    bk = 0.1 * jax.random.normal(keys[3], (H, 1, dim_out), jnp.float32)
    wv = 0.1 * jax.random.normal(keys[4], (H, dim_inp, dim_out), jnp.float32)
    bv = 0.1 * jax.random.normal(keys[5], (H, 1, dim_out), jnp.float32)
    wo = 0.1 * jax.random.normal(keys[6], (H * dim_out, dim_inp), jnp.float32)
    bo = 0.1 * jax.random.normal(keys[7], (1, dim_inp), jnp.float32)
    gamma = jnp.ones((1, dim_inp), jnp.float32)
    beta = jnp.zeros((1, dim_inp), jnp.float32)
    params = (wq, bq, wk, bk, wv, bv, wo, bo, gamma, beta)

    # inputs: x and a causal-style boolean mask (True = masked)
    x = jax.random.normal(keys[8], (B, S, dim_inp), jnp.float32)
    mask_bool = jnp.broadcast_to(
        jnp.triu(jnp.ones((S, S), jnp.bool_), k=1), (B, S, S))

    out = multi_head_attention(x, mask_bool, params, num_heads=H, dim_out=dim_out)
    out = jax.block_until_ready(out)
    assert out.shape == (B, S, dim_inp)

    # primary check: plain-JAX model of the exact kernel arithmetic
    fused = _fuse_params(params, H, dim_out, dim_inp, S)
    ref_mx = reference_mixed(x, mask_bool, fused, num_heads=H, dim_out=dim_out)
    assert jnp.allclose(out, ref_mx, atol=2e-3, rtol=2e-3), \
        "mismatch vs bf16-matched reference"

    # secondary check: pure-f32 PyTorch-faithful reference; the only delta is
    # bf16 rounding of the MXU operands (expected ~1e-2 after LayerNorm).
    ref_32 = reference_f32(x, mask_bool, params, num_heads=H, dim_out=dim_out)
    max_dev = float(jnp.max(jnp.abs(out - ref_32)))
    assert max_dev < 0.1, f"bf16 MXU-operand deviation too large: {max_dev}"

    print("KERNEL_OK")
</pallas_src>

<mosaic_0001>
module attributes {stable_mosaic.version = 11 : i64} {
  func.func @mha_kernel(%arg0: i32, %arg1: memref<8x32xf32, #tpu.memory_space<vmem>>, %arg2: memref<1x8x8xi8, #tpu.memory_space<vmem>>, %arg3: memref<32x192xbf16, #tpu.memory_space<vmem>>, %arg4: memref<1x192xf32, #tpu.memory_space<vmem>>, %arg5: memref<64x32xbf16, #tpu.memory_space<vmem>>, %arg6: memref<3x32xf32, #tpu.memory_space<vmem>>, %arg7: memref<8x32xf32, #tpu.memory_space<vmem>>, %arg8: memref<8x64xbf16, #tpu.memory_space<vmem>>) attributes {dimension_semantics = [#tpu.dimension_semantics<parallel>], iteration_bounds = array<i64: 2>, scalar_prefetch = 0 : i64, scratch_operands = 1 : i64, tpu.core_type = #tpu.core_type<tc>, window_params = [{transform_indices = @transform_0, window_bounds = array<i64: 8, 32>}, {transform_indices = @transform_1, window_bounds = array<i64: 1, 8, 8>}, {pipeline_mode = #tpu.pipeline_mode<synchronous>, transform_indices = @transform_2, window_bounds = array<i64: 32, 192>}, {pipeline_mode = #tpu.pipeline_mode<synchronous>, transform_indices = @transform_3, window_bounds = array<i64: 1, 192>}, {pipeline_mode = #tpu.pipeline_mode<synchronous>, transform_indices = @transform_4, window_bounds = array<i64: 64, 32>}, {pipeline_mode = #tpu.pipeline_mode<synchronous>, transform_indices = @transform_5, window_bounds = array<i64: 3, 32>}, {transform_indices = @transform_6, window_bounds = array<i64: 8, 32>}]} {
    %c0 = arith.constant 0 : index
    %c0_0 = arith.constant 0 : index
    %0 = vector.load %arg1[%c0, %c0_0] : memref<8x32xf32, #tpu.memory_space<vmem>>, vector<8x32xf32>
    %1 = arith.truncf %0 : vector<8x32xf32> to vector<8x32xbf16>
    %c0_1 = arith.constant 0 : index
    %c0_2 = arith.constant 0 : index
    %2 = vector.load %arg3[%c0_1, %c0_2] : memref<32x192xbf16, #tpu.memory_space<vmem>>, vector<32x192xbf16>
    %cst = arith.constant dense<0.000000e+00> : vector<8x192xf32>
    %3 = tpu.matmul %1, %2, %cst {dimension_numbers = #tpu.dot_dimension_numbers<[1], [0], [0], [1], [0, 0, 1, 1], [], []>} : vector<8x32xbf16>, vector<32x192xbf16>, vector<8x192xf32> -> vector<8x192xf32>
    %c0_3 = arith.constant 0 : index
    %c0_4 = arith.constant 0 : index
    %4 = vector.load %arg4[%c0_3, %c0_4] : memref<1x192xf32, #tpu.memory_space<vmem>>, vector<1x192xf32>
    %5 = vector.broadcast %4 : vector<1x192xf32> to vector<8x192xf32>
    %6 = arith.addf %3, %5 : vector<8x192xf32>
    %c0_5 = arith.constant 0 : index
    %c0_6 = arith.constant 0 : index
    %c0_7 = arith.constant 0 : index
    %7 = vector.load %arg2[%c0_5, %c0_6, %c0_7] : memref<1x8x8xi8, #tpu.memory_space<vmem>>, vector<1x8x8xi8>
    %8 = vector.shape_cast %7 : vector<1x8x8xi8> to vector<8x8xi8>
    %9 = arith.sitofp %8 : vector<8x8xi8> to vector<8x8xf32>
    %cst_8 = arith.constant -1.000000e+09 : f32
    %10 = vector.broadcast %cst_8 : f32 to vector<8x8xf32>
    %11 = arith.mulf %9, %10 : vector<8x8xf32>
    %12 = vector.extract_strided_slice %6 {offsets = [0, 0], sizes = [8, 16], strides = [1, 1]} : vector<8x192xf32> to vector<8x16xf32>
    %13 = arith.truncf %12 : vector<8x16xf32> to vector<8x16xbf16>
    %14 = vector.extract_strided_slice %6 {offsets = [0, 64], sizes = [8, 16], strides = [1, 1]} : vector<8x192xf32> to vector<8x16xf32>
    %15 = arith.truncf %14 : vector<8x16xf32> to vector<8x16xbf16>
    %16 = vector.extract_strided_slice %6 {offsets = [0, 128], sizes = [8, 16], strides = [1, 1]} : vector<8x192xf32> to vector<8x16xf32>
    %17 = arith.truncf %16 : vector<8x16xf32> to vector<8x16xbf16>
    %cst_9 = arith.constant dense<0.000000e+00> : vector<8x8xf32>
    %18 = tpu.matmul %13, %15, %cst_9 {dimension_numbers = #tpu.dot_dimension_numbers<[1], [1], [0], [0], [0, 0, 1, 0], [], []>} : vector<8x16xbf16>, vector<8x16xbf16>, vector<8x8xf32> -> vector<8x8xf32>
    %19 = arith.addf %18, %11 : vector<8x8xf32>
    %cst_10 = arith.constant dense<0xFF800000> : vector<8xf32>
    %20 = vector.multi_reduction <maximumf>, %19, %cst_10 [1] : vector<8x8xf32> to vector<8xf32>
    %21 = vector.shape_cast %20 : vector<8xf32> to vector<8x1xf32>
    %22 = vector.broadcast %21 : vector<8x1xf32> to vector<8x8xf32>
    %23 = arith.subf %19, %22 : vector<8x8xf32>
    %24 = math.exp %23 : vector<8x8xf32>
    %cst_11 = arith.constant dense<0.000000e+00> : vector<8xf32>
    %25 = vector.multi_reduction <add>, %24, %cst_11 [1] : vector<8x8xf32> to vector<8xf32>
    %26 = vector.shape_cast %25 : vector<8xf32> to vector<8x1xf32>
    %27 = vector.broadcast %26 : vector<8x1xf32> to vector<8x8xf32>
    %28 = arith.divf %24, %27 : vector<8x8xf32>
    %29 = arith.truncf %28 : vector<8x8xf32> to vector<8x8xbf16>
    %cst_12 = arith.constant dense<0.000000e+00> : vector<8x16xf32>
    %30 = tpu.matmul %29, %17, %cst_12 {dimension_numbers = #tpu.dot_dimension_numbers<[1], [0], [0], [1], [0, 0, 1, 1], [], []>} : vector<8x8xbf16>, vector<8x16xbf16>, vector<8x16xf32> -> vector<8x16xf32>
    %31 = arith.truncf %30 : vector<8x16xf32> to vector<8x16xbf16>
    %c0_13 = arith.constant 0 : index
    %c0_14 = arith.constant 0 : index
    %32 = vector.load %arg8[%c0_13, %c0_14] : memref<8x64xbf16, #tpu.memory_space<vmem>>, vector<8x16xbf16>
    tpu.vector_store %arg8[%c0_13, %c0_14], %31 {strides = array<i32>} : memref<8x64xbf16, #tpu.memory_space<vmem>>, vector<8x16xbf16>,
    %33 = vector.extract_strided_slice %6 {offsets = [0, 16], sizes = [8, 16], strides = [1, 1]} : vector<8x192xf32> to vector<8x16xf32>
    %34 = arith.truncf %33 : vector<8x16xf32> to vector<8x16xbf16>
    %35 = vector.extract_strided_slice %6 {offsets = [0, 80], sizes = [8, 16], strides = [1, 1]} : vector<8x192xf32> to vector<8x16xf32>
    %36 = arith.truncf %35 : vector<8x16xf32> to vector<8x16xbf16>
    %37 = vector.extract_strided_slice %6 {offsets = [0, 144], sizes = [8, 16], strides = [1, 1]} : vector<8x192xf32> to vector<8x16xf32>
    %38 = arith.truncf %37 : vector<8x16xf32> to vector<8x16xbf16>
    %cst_15 = arith.constant dense<0.000000e+00> : vector<8x8xf32>
    %39 = tpu.matmul %34, %36, %cst_15 {dimension_numbers = #tpu.dot_dimension_numbers<[1], [1], [0], [0], [0, 0, 1, 0], [], []>} : vector<8x16xbf16>, vector<8x16xbf16>, vector<8x8xf32> -> vector<8x8xf32>
    %40 = arith.addf %39, %11 : vector<8x8xf32>
    %cst_16 = arith.constant dense<0xFF800000> : vector<8xf32>
    %41 = vector.multi_reduction <maximumf>, %40, %cst_16 [1] : vector<8x8xf32> to vector<8xf32>
    %42 = vector.shape_cast %41 : vector<8xf32> to vector<8x1xf32>
    %43 = vector.broadcast %42 : vector<8x1xf32> to vector<8x8xf32>
    %44 = arith.subf %40, %43 : vector<8x8xf32>
    %45 = math.exp %44 : vector<8x8xf32>
    %cst_17 = arith.constant dense<0.000000e+00> : vector<8xf32>
    %46 = vector.multi_reduction <add>, %45, %cst_17 [1] : vector<8x8xf32> to vector<8xf32>
    %47 = vector.shape_cast %46 : vector<8xf32> to vector<8x1xf32>
    %48 = vector.broadcast %47 : vector<8x1xf32> to vector<8x8xf32>
    %49 = arith.divf %45, %48 : vector<8x8xf32>
    %50 = arith.truncf %49 : vector<8x8xf32> to vector<8x8xbf16>
    %cst_18 = arith.constant dense<0.000000e+00> : vector<8x16xf32>
    %51 = tpu.matmul %50, %38, %cst_18 {dimension_numbers = #tpu.dot_dimension_numbers<[1], [0], [0], [1], [0, 0, 1, 1], [], []>} : vector<8x8xbf16>, vector<8x16xbf16>, vector<8x16xf32> -> vector<8x16xf32>
    %52 = arith.truncf %51 : vector<8x16xf32> to vector<8x16xbf16>
    %c0_19 = arith.constant 0 : index
    %c16 = arith.constant 16 : index
    %53 = vector.load %arg8[%c0_19, %c16] : memref<8x64xbf16, #tpu.memory_space<vmem>>, vector<8x16xbf16>
    tpu.vector_store %arg8[%c0_19, %c16], %52 {strides = array<i32>} : memref<8x64xbf16, #tpu.memory_space<vmem>>, vector<8x16xbf16>,
    %54 = vector.extract_strided_slice %6 {offsets = [0, 32], sizes = [8, 16], strides = [1, 1]} : vector<8x192xf32> to vector<8x16xf32>
    %55 = arith.truncf %54 : vector<8x16xf32> to vector<8x16xbf16>
    %56 = vector.extract_strided_slice %6 {offsets = [0, 96], sizes = [8, 16], strides = [1, 1]} : vector<8x192xf32> to vector<8x16xf32>
    %57 = arith.truncf %56 : vector<8x16xf32> to vector<8x16xbf16>
    %58 = vector.extract_strided_slice %6 {offsets = [0, 160], sizes = [8, 16], strides = [1, 1]} : vector<8x192xf32> to vector<8x16xf32>
    %59 = arith.truncf %58 : vector<8x16xf32> to vector<8x16xbf16>
    %cst_20 = arith.constant dense<0.000000e+00> : vector<8x8xf32>
    %60 = tpu.matmul %55, %57, %cst_20 {dimension_numbers = #tpu.dot_dimension_numbers<[1], [1], [0], [0], [0, 0, 1, 0], [], []>} : vector<8x16xbf16>, vector<8x16xbf16>, vector<8x8xf32> -> vector<8x8xf32>
    %61 = arith.addf %60, %11 : vector<8x8xf32>
    %cst_21 = arith.constant dense<0xFF800000> : vector<8xf32>
    %62 = vector.multi_reduction <maximumf>, %61, %cst_21 [1] : vector<8x8xf32> to vector<8xf32>
    %63 = vector.shape_cast %62 : vector<8xf32> to vector<8x1xf32>
    %64 = vector.broadcast %63 : vector<8x1xf32> to vector<8x8xf32>
    %65 = arith.subf %61, %64 : vector<8x8xf32>
    %66 = math.exp %65 : vector<8x8xf32>
    %cst_22 = arith.constant dense<0.000000e+00> : vector<8xf32>
    %67 = vector.multi_reduction <add>, %66, %cst_22 [1] : vector<8x8xf32> to vector<8xf32>
    %68 = vector.shape_cast %67 : vector<8xf32> to vector<8x1xf32>
    %69 = vector.broadcast %68 : vector<8x1xf32> to vector<8x8xf32>
    %70 = arith.divf %66, %69 : vector<8x8xf32>
    %71 = arith.truncf %70 : vector<8x8xf32> to vector<8x8xbf16>
    %cst_23 = arith.constant dense<0.000000e+00> : vector<8x16xf32>
    %72 = tpu.matmul %71, %59, %cst_23 {dimension_numbers = #tpu.dot_dimension_numbers<[1], [0], [0], [1], [0, 0, 1, 1], [], []>} : vector<8x8xbf16>, vector<8x16xbf16>, vector<8x16xf32> -> vector<8x16xf32>
    %73 = arith.truncf %72 : vector<8x16xf32> to vector<8x16xbf16>
    %c0_24 = arith.constant 0 : index
    %c32 = arith.constant 32 : index
    %74 = vector.load %arg8[%c0_24, %c32] : memref<8x64xbf16, #tpu.memory_space<vmem>>, vector<8x16xbf16>
    tpu.vector_store %arg8[%c0_24, %c32], %73 {strides = array<i32>} : memref<8x64xbf16, #tpu.memory_space<vmem>>, vector<8x16xbf16>,
    %75 = vector.extract_strided_slice %6 {offsets = [0, 48], sizes = [8, 16], strides = [1, 1]} : vector<8x192xf32> to vector<8x16xf32>
    %76 = arith.truncf %75 : vector<8x16xf32> to vector<8x16xbf16>
    %77 = vector.extract_strided_slice %6 {offsets = [0, 112], sizes = [8, 16], strides = [1, 1]} : vector<8x192xf32> to vector<8x16xf32>
    %78 = arith.truncf %77 : vector<8x16xf32> to vector<8x16xbf16>
    %79 = vector.extract_strided_slice %6 {offsets = [0, 176], sizes = [8, 16], strides = [1, 1]} : vector<8x192xf32> to vector<8x16xf32>
    %80 = arith.truncf %79 : vector<8x16xf32> to vector<8x16xbf16>
    %cst_25 = arith.constant dense<0.000000e+00> : vector<8x8xf32>
    %81 = tpu.matmul %76, %78, %cst_25 {dimension_numbers = #tpu.dot_dimension_numbers<[1], [1], [0], [0], [0, 0, 1, 0], [], []>} : vector<8x16xbf16>, vector<8x16xbf16>, vector<8x8xf32> -> vector<8x8xf32>
    %82 = arith.addf %81, %11 : vector<8x8xf32>
    %cst_26 = arith.constant dense<0xFF800000> : vector<8xf32>
    %83 = vector.multi_reduction <maximumf>, %82, %cst_26 [1] : vector<8x8xf32> to vector<8xf32>
    %84 = vector.shape_cast %83 : vector<8xf32> to vector<8x1xf32>
    %85 = vector.broadcast %84 : vector<8x1xf32> to vector<8x8xf32>
    %86 = arith.subf %82, %85 : vector<8x8xf32>
    %87 = math.exp %86 : vector<8x8xf32>
    %cst_27 = arith.constant dense<0.000000e+00> : vector<8xf32>
    %88 = vector.multi_reduction <add>, %87, %cst_27 [1] : vector<8x8xf32> to vector<8xf32>
    %89 = vector.shape_cast %88 : vector<8xf32> to vector<8x1xf32>
    %90 = vector.broadcast %89 : vector<8x1xf32> to vector<8x8xf32>
    %91 = arith.divf %87, %90 : vector<8x8xf32>
    %92 = arith.truncf %91 : vector<8x8xf32> to vector<8x8xbf16>
    %cst_28 = arith.constant dense<0.000000e+00> : vector<8x16xf32>
    %93 = tpu.matmul %92, %80, %cst_28 {dimension_numbers = #tpu.dot_dimension_numbers<[1], [0], [0], [1], [0, 0, 1, 1], [], []>} : vector<8x8xbf16>, vector<8x16xbf16>, vector<8x16xf32> -> vector<8x16xf32>
    %94 = arith.truncf %93 : vector<8x16xf32> to vector<8x16xbf16>
    %c0_29 = arith.constant 0 : index
    %c48 = arith.constant 48 : index
    %95 = vector.load %arg8[%c0_29, %c48] : memref<8x64xbf16, #tpu.memory_space<vmem>>, vector<8x16xbf16>
    tpu.vector_store %arg8[%c0_29, %c48], %94 {strides = array<i32>} : memref<8x64xbf16, #tpu.memory_space<vmem>>, vector<8x16xbf16>,
    %c0_30 = arith.constant 0 : index
    %c0_31 = arith.constant 0 : index
    %96 = vector.load %arg6[%c0_30, %c0_31] : memref<3x32xf32, #tpu.memory_space<vmem>>, vector<1x32xf32>
    %c1 = arith.constant 1 : index
    %c0_32 = arith.constant 0 : index
    %97 = vector.load %arg6[%c1, %c0_32] : memref<3x32xf32, #tpu.memory_space<vmem>>, vector<1x32xf32>
    %c2 = arith.constant 2 : index
    %c0_33 = arith.constant 0 : index
    %98 = vector.load %arg6[%c2, %c0_33] : memref<3x32xf32, #tpu.memory_space<vmem>>, vector<1x32xf32>
    %c0_34 = arith.constant 0 : index
    %c0_35 = arith.constant 0 : index
    %99 = vector.load %arg8[%c0_34, %c0_35] : memref<8x64xbf16, #tpu.memory_space<vmem>>, vector<8x64xbf16>
    %c0_36 = arith.constant 0 : index
    %c0_37 = arith.constant 0 : index
    %100 = vector.load %arg5[%c0_36, %c0_37] : memref<64x32xbf16, #tpu.memory_space<vmem>>, vector<64x32xbf16>
    %cst_38 = arith.constant dense<0.000000e+00> : vector<8x32xf32>
    %101 = tpu.matmul %99, %100, %cst_38 {dimension_numbers = #tpu.dot_dimension_numbers<[1], [0], [0], [1], [0, 0, 1, 1], [], []>} : vector<8x64xbf16>, vector<64x32xbf16>, vector<8x32xf32> -> vector<8x32xf32>
    %102 = vector.broadcast %96 : vector<1x32xf32> to vector<8x32xf32>
    %103 = arith.addf %101, %102 : vector<8x32xf32>
    %cst_39 = arith.constant dense<0.000000e+00> : vector<8xf32>
    %104 = vector.multi_reduction <add>, %103, %cst_39 [1] : vector<8x32xf32> to vector<8xf32>
    %105 = vector.shape_cast %104 : vector<8xf32> to vector<8x1xf32>
    %cst_40 = arith.constant 3.200000e+01 : f32
    %106 = vector.broadcast %cst_40 : f32 to vector<8x1xf32>
    %107 = arith.divf %105, %106 : vector<8x1xf32>
    %108 = vector.broadcast %107 : vector<8x1xf32> to vector<8x32xf32>
    %109 = arith.subf %103, %108 : vector<8x32xf32>
    %110 = arith.mulf %109, %109 : vector<8x32xf32>
    %cst_41 = arith.constant dense<0.000000e+00> : vector<8xf32>
    %111 = vector.multi_reduction <add>, %110, %cst_41 [1] : vector<8x32xf32> to vector<8xf32>
    %112 = vector.shape_cast %111 : vector<8xf32> to vector<8x1xf32>
    %cst_42 = arith.constant 3.200000e+01 : f32
    %113 = vector.broadcast %cst_42 : f32 to vector<8x1xf32>
    %114 = arith.divf %112, %113 : vector<8x1xf32>
    %115 = vector.broadcast %107 : vector<8x1xf32> to vector<8x32xf32>
    %116 = arith.subf %103, %115 : vector<8x32xf32>
    %cst_43 = arith.constant 9.99999974E-6 : f32
    %117 = vector.broadcast %cst_43 : f32 to vector<8x1xf32>
    %118 = arith.addf %114, %117 : vector<8x1xf32>
    %119 = math.rsqrt %118 : vector<8x1xf32>
    %120 = vector.broadcast %119 : vector<8x1xf32> to vector<8x32xf32>
    %121 = arith.mulf %116, %120 : vector<8x32xf32>
    %122 = vector.broadcast %97 : vector<1x32xf32> to vector<8x32xf32>
    %123 = arith.mulf %121, %122 : vector<8x32xf32>
    %124 = vector.broadcast %98 : vector<1x32xf32> to vector<8x32xf32>
    %125 = arith.addf %123, %124 : vector<8x32xf32>
    %c0_44 = arith.constant 0 : index
    %c0_45 = arith.constant 0 : index
    %126 = vector.load %arg7[%c0_44, %c0_45] : memref<8x32xf32, #tpu.memory_space<vmem>>, vector<8x32xf32>
    tpu.vector_store %arg7[%c0_44, %c0_45], %125 {strides = array<i32>} : memref<8x32xf32, #tpu.memory_space<vmem>>, vector<8x32xf32>,
    return
  }
  func.func @transform_0(%arg0: i32) -> (i32, i32) {
    %c0_i32 = arith.constant 0 : i32
    %c0_i32_0 = arith.constant 0 : i32
    return %arg0, %c0_i32 : i32, i32
  }
  func.func @transform_1(%arg0: i32) -> (i32, i32, i32) {
    %c0_i32 = arith.constant 0 : i32
    %c0_i32_0 = arith.constant 0 : i32
    %c0_i32_1 = arith.constant 0 : i32
    return %arg0, %c0_i32, %c0_i32_0 : i32, i32, i32
  }
  func.func @transform_2(%arg0: i32) -> (i32, i32) {
    %c0_i32 = arith.constant 0 : i32
    %c0_i32_0 = arith.constant 0 : i32
    %c0_i32_1 = arith.constant 0 : i32
    return %c0_i32, %c0_i32_0 : i32, i32
  }
  func.func @transform_3(%arg0: i32) -> (i32, i32) {
    %c0_i32 = arith.constant 0 : i32
    %c0_i32_0 = arith.constant 0 : i32
    %c0_i32_1 = arith.constant 0 : i32
    return %c0_i32, %c0_i32_0 : i32, i32
  }
  func.func @transform_4(%arg0: i32) -> (i32, i32) {
    %c0_i32 = arith.constant 0 : i32
    %c0_i32_0 = arith.constant 0 : i32
    %c0_i32_1 = arith.constant 0 : i32
    return %c0_i32, %c0_i32_0 : i32, i32
  }
  func.func @transform_5(%arg0: i32) -> (i32, i32) {
    %c0_i32 = arith.constant 0 : i32
    %c0_i32_0 = arith.constant 0 : i32
    %c0_i32_1 = arith.constant 0 : i32
    return %c0_i32, %c0_i32_0 : i32, i32
  }
  func.func @transform_6(%arg0: i32) -> (i32, i32) {
    %c0_i32 = arith.constant 0 : i32
    %c0_i32_0 = arith.constant 0 : i32
    return %arg0, %c0_i32 : i32, i32
  }
}

</mosaic_0001>

<bundles_post_ra>
// kernel: tpu_custom_call.1
= control target key start
LH: loop header
LB: loop body
LE: loop exit
PB: predicated region body
PF: predicated region fallthrough
CT: control target
= control target key end

     0   :  { %11 = vsyncpa [#allocation4], 0  ;;  %s1462_s0 = inlined_call_operand.vmem [shape: f32[16,32], index: 0, kind: input, shape index: {}]   ;;  %s1463_s1 = inlined_call_operand.hbm [shape: s8[2,8,8], index: 1, kind: input, shape index: {}]   ;;  %s1464_s2 = inlined_call_operand.vmem [shape: bf16[32,192], index: 2, kind: input, shape index: {}]   ;;  %s1465_s3 = inlined_call_operand.hbm [shape: f32[1,192], index: 3, kind: input, shape index: {}]   ;;  %s1466_s4 = inlined_call_operand.vmem [shape: bf16[64,32], index: 4, kind: input, shape index: {}]   ;;  %s1467_s5 = inlined_call_operand.vmem [shape: f32[3,32], index: 5, kind: input, shape index: {}]   ;;  %s1468_s6 = inlined_call_operand.hbm [shape: f32[16,32], index: 6, kind: output, shape index: {}]  }
   0x1   :  { %13 = vsyncpa [#allocation4 + $0x1], 0 }
   0x2   :  { %14 = vsyncpa [#allocation7], 0 }
   0x3   :  { %15 = vsyncpa [#allocation5], 0 }
   0x4   :  { %17 = vsyncpa [#allocation5 + $0x1], 0  ;;  %s1197_s21 = smov 0   ;;  %s1199_s22 = smov 0  }
   0x5   :  { %s1201_s23 = smov 0   ;;  %s1203_s24 = smov 0  }
   0x6 LB: > { %s1218_s25 = sadd.s32 4294967295, %s1151_s24   ;;  %s867_s26 = sadd.s32 4294967294, %s1151_s24   ;;  %s1151_s24 = sphi %s1203_s24, %s1478_s24   ;;  %s1147_s23 = sphi %s1201_s23, %s1477_s23   ;;  %s1143_s22 = sphi %s1199_s22, %s1476_s22   ;;  %s1139_s21 = sphi %s1197_s21, %s1475_s21  }
   0x7   : > { %p69_p0 = scmp.ne.s32.totalorder %s1143_s22, %s1139_s21  ;;  %p70_p1 = scmp.eq.s32.totalorder %s1218_s25, 0 }
   0x8   : > { %p177_p2 = scmp.eq.s32.totalorder %s1218_s25, 1  ;;  %p183_p3 = scmp.eq.s32.totalorder %s867_s26, 1 }
   0x9   : > { %p1227_p4 = por %p70_p1, %p69_p0  ;;  %p868_p5 = scmp.ge.s32.totalorder %s1151_s24, 1 }
   0xa   : > { %p1232_p6 = por %p183_p3, %p69_p0  ;;  %p190_p7 = scmp.lt.s32.totalorder %s1151_s24, 3 }
   0xb   : > { %s205_s7 = sshll.u32 %s1465_s3, 4  ;;  %s1153_s9 = smov [#allocation6]   ;;  %s206_s7 = int_to_ptr.hbm [resolvable:$true] %s205_s7 }
   0xc   : > { %p1240_p8 = pnand %p868_p5, %p190_p7  ;;  %s207_s10 = sshll.u32 %s1153_s9, 4  ;;  %s208_s10 = int_to_ptr.vmem [resolvable:$true] %s207_s10 }
   0xd   : > { %s1250_s11 = sadd.s32 1, %s1151_s24   ;;  %s56_s12 = sadd.s32 1, %s1147_s23 }
   0xe   : > { %p941_p10 = pneg %p1240_p8  ;;  %s53_s13 = ssub.s32 %s1151_s24, %s1250_s11 }
   0xf   : > { %p54_p12 = scmp.eq.s32.totalorder %s53_s13, 0  ;;  %p63_p13 = scmp.ne.s32.totalorder %s1147_s23, %s1143_s22 }
  0x10   : > { %p942_p11 = pnand %p941_p10, %p70_p1  ;;  %p64_p0 = scmp.eq.s32.totalorder %s1151_s24, 0 }
  0x11   : > { %s1259_s14 = scalar_select %p54_p12, %s1147_s23, %s56_s12  }
  0x12   : > { %944 = dma.hbm_to_vmem [thread:$0]  (!%p942_p11), %s206_s7, 32, %s208_s10, [#allocation7]  }
  0x13   : > { %p1263_p3 = por %p177_p2, %p63_p13  ;;  %p954_p5 = scmp.lt.s32.totalorder %s1151_s24, 2 }
  0x14   : > { %s231_s16 = sand.u32 1, %s1147_s23   ;;  %s872_s17 = sshll.u32 %s1151_s24, 1 }
  0x15   : > { %p65_p7 = por %p64_p0, %p63_p13  ;;  %s871_s18 = sshll.u32 %s231_s16, 1 }
  0x16   : > { %s239_s26 = scalar_lea.hbm %s1463_s1, %s872_s17  ;;  %s235_s30 = scalar_lea.vmem [#allocation3], %s871_s18 }
  0x17   : > { %s241_s29 = sshll.u32 %s239_s26, 4  ;;  %s243_s7 = sshll.u32 %s235_s30, 4  ;;  %s242_s29 = int_to_ptr.hbm [resolvable:$true] %s241_s29  ;;  %s244_s7 = int_to_ptr.vmem [resolvable:$true] %s243_s7 }
  0x18   : > { %p1273_p10 = pnand %p954_p5, %p65_p7  ;;  %s232_s10 = scalar_lea.sflag [#allocation4], %s231_s16 }
  0x19   : > { %s1051_s12 = sshra.s32 %s242_s29, 4  ;;  %s1058_s18 = scalar_lea.hbm %s1463_s1, 4  ;;  %s1052_s12 = int_to_ptr.hbm [resolvable:$true] %s1051_s12 }
  0x1a   : > { %s1053_s13 = scalar_lea.hbm %s1052_s12, 2  ;;  %p1055_p11 = pneg %p1273_p10 }
  0x1b   : > { %p1054_p2 = scmp.ne.s32.totalorder %s1052_s12, %s1053_s13  ;;  %p1059_p0 = scmp.lt.s32.totalorder %s1052_s12, %s1463_s1 }
  0x1c   : > { %p1060_p5 = scmp.lt.s32.totalorder %s1058_s18, %s1053_s13 }
  0x1d   : > { %p1056_p12 = pnand %p1055_p11, %p1054_p2 }
  0x1e   : > { %p1061_p7 = por %p1060_p5, %p1059_p0 }
  0x1f   : > { %p1057_p13 = pneg %p1056_p12 }
  0x21   : > { %p1062_p9 = pnand %p1061_p7, %p1057_p13 }
  0x23   : > { %1065 = shalt.err (!%p1062_p9)
}
  0x24   : > { %948 = dma.hbm_to_vmem [thread:$0]  (!%p1273_p10), %s242_s29, 32, %s244_s7, %s232_s10  }
  0x25   : > { %252 = sbr.rel (%p1240_p8) target bundleno = 1777 (0x6f1), region = 44  ;;  %s1290_s16 = sand.u32 (!%p1240_p8), 1, %s1143_s22  }
  0x26   : > { %s874_s30 = sshll.u32 (!%p1240_p8), %s1290_s16, 1  ;;  %s255_s17 = scalar_lea.sflag (!%p1240_p8), [#allocation4], %s1290_s16 }
  0x27   : > { %s1294_s19 = scalar_lea.vmem (!%p1240_p8), [#allocation3], %s874_s30 }
  0x2a   : > { %1126 = dma.done.wait (%p1227_p4), %s255_s17, 32  }
  0x2b   : > { %1128 = vsyncadd (%p1227_p4), %s255_s17, 4294967264 }
  0x2c   : > { %1130 = dma.done.wait (%p70_p1), [#allocation7], 32  }
  0x2d   : > { %1132 = vsyncadd (%p70_p1), [#allocation7], 4294967264  ;;  %p297_p8 = scmp.lt.s32.totalorder %s1218_s25, 1  ;;  %v888_v0 = vld [vmem:[%s1464_s2 + $0x10] sm:$0xf]  ;;  %vm334_vm0 = vcmask 261120  }
  0x2e   : > { %v928_v1 = vld [vmem:[%s1464_s2 + $0x14] sm:$0xf0]  ;;  %v880_v2 = vld [vmem:[%s1464_s2] sm:$0xf]  ;;  %v926_v4 = vld [vmem:[%s1464_s2 + $0x4] sm:$0xf0] }
  0x2f   : > { %s298_s8 = scalar_select %p297_p8, %s1218_s25, 1  ;;  %v889_v3 = vor.u32 %v928_v1, %v888_v0  ;;  %v881_v5 = vor.u32 %v926_v4, %v880_v2  ;;  %v308_v8 = vld [vmem:[#allocation6] sm:$0x3]  ;;  %v927_v14 = vld [vmem:[%s1464_s2 + $0x14] sm:$0xf]  ;;  %vm373_vm1 = vcmask 130048  }
  0x30   : > { %v310_v9 = vperm.slane %v308_v8, 0  ;;  %s1156_s7 = smov 32   ;;  %s1157_s9 = smov 16   ;;  %v890_v15 = vld [vmem:[%s1464_s2 + $0x18] sm:$0xf0]  ;;  %vm393_vm2 = vcmask 64512  }
  0x31   : > { %s877_s29 = sshll.u32 %s298_s8, 3  ;;  %344 = vmatpush.bf16.msra.mxu0 %v889_v3  ;;  %s1154_s8 = smov 112   ;;  %v893_v16 = vor.u32 %v927_v14, %v890_v15  ;;  %v925_v17 = vld [vmem:[%s1464_s2 + $0x4] sm:$0xf]  ;;  %v882_v18 = vld [vmem:[%s1464_s2 + $0x8] sm:$0xf0] }
  0x32   : > { %s300_s26 = scalar_lea.vmem %s1462_s0, %s877_s29  ;;  %s1155_s29 = smov 64   ;;  %v885_v19 = vor.u32 %v925_v17, %v882_v18  ;;  %v364_v29 = vld [vmem:[%s1294_s19] sm:$0x3]  ;;  %v311_v39 = vperm.slane %v308_v8, 1  ;;  %vm422_vm3 = vcmask 1043456   ;;  %vm440_vm8 = vcmask 125952  }
  0x33   : > { %v302_v6 = vld [vmem:[%s300_s26] sm:$0xff]  ;;  %s1158_s10 = smov 96   ;;  %s1159_s12 = smov 80   ;;  %357 = vmatpush.bf16.msra.mxu1 %v893_v16  ;;  %v365_v30 = vunpack.c.0.s8 %v364_v29 }
  0x34   : > { %v303_v7 = vpack.c.bf16 %v302_v6, %v302_v6  ;;  %s1160_s19 = smov 48   ;;  %s876_s30 = sshll.u32 %s1290_s16, 3 }
  0x35   : > { %345 = vmatpush.bf16.msra.mxu0 %v881_v5  ;;  %v366_v31 = vcvt.s32.f32 %v365_v30  ;;  %s922_s17 = sshll.u32 %s1218_s25, 3  ;;  %s296_s25 = scalar_lea.vmem [#allocation8], %s876_s30 }
  0x36   : > { %s772_s13 = sshll.u32 %s296_s25, 4  ;;  %s760_s18 = scalar_lea.sflag [#allocation5], %s1290_s16  ;;  %s773_s13 = int_to_ptr.vmem [resolvable:$true] %s772_s13 }
  0x37   : > { %358 = vmatpush.bf16.msra.mxu1 %v885_v19  ;;  %v1358_v32 = vmul.f32 -1e+09, %v366_v31  ;;  %s1101_s30 = scalar_lea.hbm %s1468_s6, 16 }
  0x38   : > { %894 = vmatmul.msk.bf16.vlgmr.msra.gmra.mxu0 %vm334_vm0, %v303_v7 }
  0x3a   : > { %895 = vmatmul.msk.bf16.vlgmr.msra.gmra.mxu1 %vm334_vm0, %v303_v7 }
  0xb5   : > { %v347_v10 = vpop.f32.mrf.mxu0 }
  0xb6   : > { %v348_v11 = vadd.f32 %v347_v10, %v310_v9 }
  0xb7   : > { %v360_v27 = vpop.f32.mrf.mxu1 }
  0xb8   : > { %v1322_v12 = vpack.c.bf16 %v348_v11, %v348_v11  ;;  %v361_v41 = vadd.f32 %v360_v27, %v311_v39 }
  0xba   : > { %442 = vrot.lane.b32.xlu2 %v1322_v12, %s1154_s8  ;;  %371 = vrot.lane.b32.xlu0 %v1322_v12, %s1155_s29  ;;  %v1367_v43 = vpack.c.bf16 %v361_v41, %v361_v41 }
  0xbc   : > { %v424_v49 = vsel %vm422_vm3, %v1367_v43, 0 }
  0xbd   : > { %v349_v13 = vpop.f32.mrf.mxu0  ;;  %433 = vmatpush.bf16.msra.mxu3 %v424_v49 }
  0xbf   : > { %v362_v28 = vpop.f32.mrf.mxu1 }
  0xc2   : > { %521 = vrot.lane.b32.xlu2 %v1322_v12, %s1156_s7 }
  0xca   : > { %597 = vrot.lane.b32.xlu2 %v1322_v12, %s1157_s9 }
  0xd2   : > { %519 = vrot.lane.b32.xlu2 %v1322_v12, %s1158_s10 }
  0xda   : > { %595 = vrot.lane.b32.xlu2 %v1322_v12, %s1159_s12 }
 0x114   : > { %v1348_v20 = vpop.permute.xlu2 %442 }
 0x11c   : > { %v522_v21 = vpop.permute.xlu2 %521 }
 0x11d   : > { %v527_v22 = vsel %vm373_vm1, %v522_v21, 0 }
 0x11e   : > { %536 = vmatpush.bf16.xpose.msrb.mxu1 %v527_v22 }
 0x124   : > { %v1351_v23 = vpop.permute.xlu2 %597 }
 0x125   : > { %v603_v5 = vsel %vm373_vm1, %v1351_v23, 0 }
 0x12c   : > { %v520_v24 = vpop.permute.xlu2 %519  ;;  %v372_v25 = vpop.permute.xlu0 %371 }
 0x12d   : > { %900 = vmatmul.msk.bf16.vlgmr.msrb.gmra.mxu1 %vm373_vm1, %v520_v24  ;;  %v378_v26 = vsel %vm373_vm1, %v372_v25, 0 }
 0x12e   : > { %387 = vmatpush.bf16.xpose.msra.mxu2 %v378_v26 }
 0x134   : > { %v596_v51 = vpop.permute.xlu2 %595 }
 0x135   : > { %896 = vmatmul.msk.bf16.vlgmr.msra.gmra.mxu2 %vm373_vm1, %v1322_v12 }
 0x1aa   : > { %v538_v33 = vpop.f32.mrf.mxu1 }
 0x1ab   : > { %v1361_v34 = vadd.f32 %v538_v33, %v1358_v32 }
 0x1ad   : > { %v542_v35 = vsel %vm393_vm2, %v1361_v34, -inf }
 0x1ae   : > { %543 = vmax.xlane.f32.xlu2 %v542_v35 }
 0x1b2   : > { %v540_v36 = vpop.f32.mrf.mxu1 }
 0x1b8   : > { %v389_v37 = vpop.f32.mrf.mxu2 }
 0x1b9   : > { %v390_v38 = vadd.f32 %v389_v37, %v1358_v32 }
 0x1bb   : > { %v394_v40 = vsel %vm393_vm2, %v390_v38, -inf }
 0x1bc   : > { %395 = vmax.xlane.f32.xlu0 %v394_v40 }
 0x1c0   : > { %v391_v42 = vpop.f32.mrf.mxu2 }
 0x1c6   : > { %567 = vrot.lane.b32.xlu2 %v1367_v43, %s1158_s10 }
 0x221   : > { %v544_v58 = vpop.xlane.xlu2 %543 }
 0x222   : > { %v545_v13 = vsub.f32 %v1361_v34, %v544_v58 }
 0x224   : > { %v546_v14 = vmul.f32 1.442695, %v545_v13 }
 0x229   : > { %v568_v1 = vpop.permute.xlu2 %567 }
 0x22a   : > { %v573_v2 = vsel %vm422_vm3, %v568_v1, 0 }
 0x22b   : > { %582 = vmatpush.bf16.msrb.mxu2 %v573_v2 }
 0x22f   : > { %v396_v44 = vpop.xlane.xlu0 %395 }
 0x230   : > { %v397_v45 = vsub.f32 %v390_v38, %v396_v44 }
 0x232   : > { %v398_v46 = vmul.f32 1.442695, %v397_v45 }
 0x234   : > { %1001 = vpow2.f32 %v398_v46 }
 0x23a   : > { %v1002_v47 = vpop.eup %1001 }
 0x23b   : > { %v400_v48 = vsel %vm393_vm2, %v1002_v47, 0.0 }
 0x23c   : > { %401 = vadd.xlane.f32.xlu1 %v400_v48 }
 0x255   : > { %444 = vrot.lane.b32.xlu1 %v1322_v12, %s1160_s19 }
 0x2af   : > { %v402_v50 = vpop.xlane.xlu1 %401 }
 0x2b0   : > { %1003 = vrcp.f32 %v402_v50  ;;  %v414_v55 = vand.u32 2147483648, %v402_v50  ;;  %v412_v57 = vand.u32 2147483647, %v402_v50  ;;  %vm408_vm5 = vweird.f32 %v402_v50 }
 0x2b1   : > { %1005 = vpow2.f32 %v546_v14 }
 0x2b2   : > { %v415_v60 = vor.u32 1.1754944e-38, %v414_v55  ;;  %vm413_vm7 = vcmp.eq.f32.partialorder %v412_v57, 8.507059e+37 }
 0x2b6   : > { %v1004_v52 = vpop.eup %1003 }
 0x2b7   : > { %v404_v53 = vmul.f32 %v1004_v52, %v402_v50  ;;  %vm409_vm4 = vweird.f32 %v1004_v52  ;;  %v1006_v18 = vpop.eup %1005 }
 0x2b8   : > { %vm410_vm6 = vmor %vm408_vm5, %vm409_vm4 }
 0x2b9   : > { %v405_v54 = vsub.f32 1.0, %v404_v53 }
 0x2bb   : > { %v406_v56 = vmul.f32 %v1004_v52, %v405_v54 }
 0x2bd   : > { %v407_v59 = vadd.f32 %v1004_v52, %v406_v56 }
 0x2bf   : > { %v411_v61 = vsel %vm410_vm6, %v1004_v52, %v407_v59 }
 0x2c0   : > { %v416_v62 = vsel %vm413_vm7, %v415_v60, %v411_v61 }
 0x2c1   : > { %v417_v63 = vmul.f32 %v1002_v47, %v416_v62 }
 0x2c3   : > { %v418_v0 = vpack.c.bf16 %v417_v63, %v417_v63 }
 0x2c5   : > { %897 = vmatmul.msk.bf16.vlgmr.msra.gmra.mxu3 %vm393_vm2, %v418_v0 }
 0x2c7   : > { %v445_v3 = vpop.permute.xlu1 %444 }
 0x2c8   : > { %v450_v4 = vsel %vm373_vm1, %v445_v3, 0 }
 0x2c9   : > { %459 = vmatpush.bf16.xpose.msrb.mxu3 %v450_v4 }
 0x2d1   : > { %612 = vmatpush.bf16.xpose.msra.mxu3 %v603_v5 }
 0x2d5   : > { %898 = vmatmul.msk.bf16.vlgmr.msrb.gmra.mxu3 %vm373_vm1, %v1348_v20  ;;  %v548_v20 = vsel %vm393_vm2, %v1006_v18, 0.0 }
 0x2e5   : > { %902 = vmatmul.msk.bf16.vlgmr.msra.gmra.mxu3 %vm373_vm1, %v596_v51 }
 0x348   : > { %v435_v6 = vpop.f32.mrf.mxu3 }
 0x349   : > { %v439_v7 = vpack.c.bf16 %v435_v6, %v435_v6 }
 0x34b   : > { %441 = vst.msk [vmem:[#allocation2] sm:$0xf] %vm440_vm8, %v439_v7  ;;  %vm669_vm8 = vcmask 519552  }
 0x350   : > { %v437_v8 = vpop.f32.mrf.mxu3 }
 0x358   : > { %v461_v9 = vpop.f32.mrf.mxu3 }
 0x359   : > { %v462_v10 = vadd.f32 %v461_v9, %v1358_v32 }
 0x35b   : > { %v465_v11 = vsel %vm393_vm2, %v462_v10, -inf }
 0x35c   : > { %466 = vmax.xlane.f32.xlu1 %v465_v11 }
 0x360   : > { %v463_v12 = vpop.f32.mrf.mxu3 }
 0x368   : > { %v614_v15 = vpop.f32.mrf.mxu3 }
 0x369   : > { %v615_v16 = vadd.f32 %v614_v15, %v1358_v32 }
 0x36b   : > { %v618_v17 = vsel %vm393_vm2, %v615_v16, -inf }
 0x36c   : > { %619 = vmax.xlane.f32.xlu0 %v618_v17 }
 0x370   : > { %v616_v19 = vpop.f32.mrf.mxu3 }
 0x371   : > { %v932_v19 = vld [vmem:[%s1466_s4 + $0x18] sm:$0xff] }
 0x372   : > { %716 = vmatpush.bf16.msra.mxu1 %v932_v19 }
 0x374   : > { %549 = vadd.xlane.f32.xlu0 %v548_v20  ;;  %v931_v20 = vld [vmem:[%s1466_s4 + $0x10] sm:$0xff] }
 0x375   : > { %491 = vrot.lane.b32.xlu1 %v1367_v43, %s1154_s8 }
 0x376   : > { %717 = vmatpush.bf16.msra.mxu1 %v931_v20 }
 0x3cf   : > { %v467_v21 = vpop.xlane.xlu1 %466 }
 0x3d0   : > { %v468_v22 = vsub.f32 %v462_v10, %v467_v21  ;;  %v930_v21 = vld [vmem:[%s1466_s4 + $0x8] sm:$0xff] }
 0x3d1   : > { %718 = vmatpush.bf16.msra.mxu1 %v930_v21 }
 0x3d2   : > { %v469_v23 = vmul.f32 1.442695, %v468_v22  ;;  %v929_v22 = vld [vmem:[%s1466_s4] sm:$0xff] }
 0x3d4   : > { %1007 = vpow2.f32 %v469_v23 }
 0x3d5   : > { %719 = vmatpush.bf16.msra.mxu1 %v929_v22 }
 0x3da   : > { %v1008_v24 = vpop.eup %1007 }
 0x3db   : > { %v471_v25 = vsel %vm393_vm2, %v1008_v24, 0.0 }
 0x3dc   : > { %472 = vadd.xlane.f32.xlu0 %v471_v25 }
 0x3df   : > { %v620_v26 = vpop.xlane.xlu0 %619 }
 0x3e0   : > { %v621_v27 = vsub.f32 %v615_v16, %v620_v26 }
 0x3e2   : > { %v622_v28 = vmul.f32 1.442695, %v621_v27  ;;  %v998_v27 = vld [vmem:[%s1467_s5] ss:$0 sm:$0xff] }
 0x3e4   : > { %1009 = vpow2.f32 %v622_v28 }
 0x3e7   : > { %v550_v29 = vpop.xlane.xlu0 %549  ;;  %v492_v30 = vpop.permute.xlu1 %491 }
 0x3e8   : > { %1011 = vrcp.f32 %v550_v29  ;;  %v497_v31 = vsel %vm422_vm3, %v492_v30, 0  ;;  %v562_v37 = vand.u32 2147483648, %v550_v29  ;;  %v560_v39 = vand.u32 2147483647, %v550_v29 }
 0x3e9   : > { %506 = vmatpush.bf16.msrb.mxu0 %v497_v31  ;;  %vm556_vm10 = vweird.f32 %v550_v29 }
 0x3ea   : > { %v1010_v32 = vpop.eup %1009  ;;  %v563_v41 = vor.u32 1.1754944e-38, %v562_v37  ;;  %vm561_vm12 = vcmp.eq.f32.partialorder %v560_v39, 8.507059e+37 }
 0x3eb   : > { %v624_v33 = vsel %vm393_vm2, %v1010_v32, 0.0 }
 0x3ec   : > { %625 = vadd.xlane.f32.xlu0 %v624_v33 }
 0x3ee   : > { %v1012_v34 = vpop.eup %1011 }
 0x3ef   : > { %v552_v35 = vmul.f32 %v1012_v34, %v550_v29  ;;  %vm557_vm9 = vweird.f32 %v1012_v34 }
 0x3f0   : > { %vm558_vm11 = vmor %vm556_vm10, %vm557_vm9  ;;  %vm708_vm9 = vcmask 523264  }
 0x3f1   : > { %v553_v36 = vsub.f32 1.0, %v552_v35 }
 0x3f3   : > { %v554_v38 = vmul.f32 %v1012_v34, %v553_v36 }
 0x3f5   : > { %v555_v40 = vadd.f32 %v1012_v34, %v554_v38 }
 0x3f7   : > { %v559_v42 = vsel %vm558_vm11, %v1012_v34, %v555_v40 }
 0x3f8   : > { %v564_v44 = vsel %vm561_vm12, %v563_v41, %v559_v42 }
 0x3f9   : > { %v565_v45 = vmul.f32 %v1006_v18, %v564_v44 }
 0x3fb   : > { %v566_v46 = vpack.c.bf16 %v565_v45, %v565_v45 }
 0x3fd   : > { %901 = vmatmul.msk.bf16.vlgmr.msrb.gmra.mxu2 %vm393_vm2, %v566_v46 }
 0x400   : > { %643 = vrot.lane.b32.xlu0 %v1367_v43, %s1159_s12  ;;  %s770_s12 = scalar_lea.hbm %s1468_s6, %s922_s17 }
 0x44f   : > { %v473_v47 = vpop.xlane.xlu0 %472 }
 0x450   : > { %1013 = vrcp.f32 %v473_v47  ;;  %v485_v52 = vand.u32 2147483648, %v473_v47  ;;  %v483_v53 = vand.u32 2147483647, %v473_v47  ;;  %vm479_vm14 = vweird.f32 %v473_v47 }
 0x452   : > { %v486_v55 = vor.u32 1.1754944e-38, %v485_v52  ;;  %vm484_vm1 = vcmp.eq.f32.partialorder %v483_v53, 8.507059e+37 }
 0x456   : > { %v1014_v48 = vpop.eup %1013 }
 0x457   : > { %v475_v49 = vmul.f32 %v1014_v48, %v473_v47  ;;  %vm480_vm13 = vweird.f32 %v1014_v48 }
 0x458   : > { %vm481_vm15 = vmor %vm479_vm14, %vm480_vm13 }
 0x459   : > { %v476_v50 = vsub.f32 1.0, %v475_v49 }
 0x45b   : > { %v477_v51 = vmul.f32 %v1014_v48, %v476_v50 }
 0x45d   : > { %v478_v54 = vadd.f32 %v1014_v48, %v477_v51 }
 0x45f   : > { %v626_v56 = vpop.xlane.xlu0 %625  ;;  %v482_v57 = vsel %vm481_vm15, %v1014_v48, %v478_v54  ;;  %v999_v54 = vld [vmem:[%s1467_s5 + $0x1] ss:$0 sm:$0xff] }
 0x460   : > { %1015 = vrcp.f32 %v626_v56  ;;  %v487_v58 = vsel %vm484_vm1, %v486_v55, %v482_v57  ;;  %v638_v63 = vand.u32 2147483648, %v626_v56  ;;  %v636_v1 = vand.u32 2147483647, %v626_v56  ;;  %v1000_v57 = vld [vmem:[%s1467_s5 + $0x2] ss:$0 sm:$0xff] }
 0x461   : > { %v488_v59 = vmul.f32 %v1008_v24, %v487_v58  ;;  %vm632_vm5 = vweird.f32 %v626_v56 }
 0x462   : > { %v639_v3 = vor.u32 1.1754944e-38, %v638_v63  ;;  %vm637_vm7 = vcmp.eq.f32.partialorder %v636_v1, 8.507059e+37 }
 0x463   : > { %v489_v43 = vpack.c.bf16 %v488_v59, %v488_v59 }
 0x465   : > { %899 = vmatmul.msk.bf16.vlgmr.msrb.gmra.mxu0 %vm393_vm2, %v489_v43 }
 0x466   : > { %v1016_v60 = vpop.eup %1015 }
 0x467   : > { %v628_v61 = vmul.f32 %v1016_v60, %v626_v56  ;;  %vm633_vm4 = vweird.f32 %v1016_v60 }
 0x468   : > { %vm634_vm6 = vmor %vm632_vm5, %vm633_vm4 }
 0x469   : > { %v629_v62 = vsub.f32 1.0, %v628_v61 }
 0x46b   : > { %v630_v0 = vmul.f32 %v1016_v60, %v629_v62 }
 0x46d   : > { %v631_v2 = vadd.f32 %v1016_v60, %v630_v0 }
 0x46f   : > { %v635_v4 = vsel %vm634_vm6, %v1016_v60, %v631_v2 }
 0x470   : > { %v640_v5 = vsel %vm637_vm7, %v639_v3, %v635_v4 }
 0x471   : > { %v641_v6 = vmul.f32 %v1010_v32, %v640_v5  ;;  %v1161_v32 = vmov 32.0  }
 0x472   : > { %v644_v7 = vpop.permute.xlu0 %643  ;;  %1017 = vrcp.f32 %v1161_v32 }
 0x473   : > { %v649_v8 = vsel %vm422_vm3, %v644_v7, 0  ;;  %v642_v9 = vpack.c.bf16 %v641_v6, %v641_v6  ;;  %vm593_vm3 = vcmask 388352  }
 0x474   : > { %658 = vmatpush.bf16.msra.mxu0 %v649_v8 }
 0x477   : > { %903 = vmatmul.msk.bf16.vlgmr.msra.gmra.mxu0 %vm393_vm2, %v642_v9  ;;  %vm517_vm2 = vcmask 257152  }
 0x478   : > { %v1018_v33 = vpop.eup %1017 }
 0x479   : > { %v729_v34 = vmul.f32 32.0, %v1018_v33  ;;  %vm733_vm10 = vweird.f32 %v1018_v33 }
 0x47b   : > { %v730_v35 = vsub.f32 1.0, %v729_v34 }
 0x47d   : > { %v731_v36 = vmul.f32 %v1018_v33, %v730_v35 }
 0x47f   : > { %v732_v37 = vadd.f32 %v1018_v33, %v731_v36 }
 0x480   : > { %v584_v10 = vpop.f32.mrf.mxu2 }
 0x481   : > { %v588_v11 = vpack.c.bf16 %v584_v10, %v584_v10  ;;  %v734_v38 = vsel %vm733_vm10, %v1018_v33, %v732_v37 }
 0x483   : > { %590 = vrot.lane.b32.xlu0 %v588_v11, %s1156_s7 }
 0x488   : > { %v586_v12 = vpop.f32.mrf.mxu2 }
 0x4e2   : > { %v508_v13 = vpop.f32.mrf.mxu0 }
 0x4e3   : > { %v512_v14 = vpack.c.bf16 %v508_v13, %v508_v13 }
 0x4e5   : > { %514 = vrot.lane.b32.xlu1 %v512_v14, %s1157_s9  ;;  %s774_s9 = sshll.u32 %s770_s12, 4  ;;  %s775_s9 = int_to_ptr.hbm [resolvable:$true] %s774_s9 }
 0x4e6   : > { %s1095_s20 = sshra.s32 %s775_s9, 4  ;;  %s1096_s20 = int_to_ptr.hbm [resolvable:$true] %s1095_s20 }
 0x4e7   : > { %s1097_s26 = scalar_lea.hbm %s1096_s20, 8  ;;  %p1102_p10 = scmp.lt.s32.totalorder %s1096_s20, %s1468_s6 }
 0x4e8   : > { %p1098_p1 = scmp.ne.s32.totalorder %s1096_s20, %s1097_s26  ;;  %p1103_p2 = scmp.lt.s32.totalorder %s1101_s30, %s1097_s26 }
 0x4ea   : > { %v510_v15 = vpop.f32.mrf.mxu0  ;;  %p1099_p4 = pnand %p1098_p1, %p1263_p3  ;;  %p1104_p11 = por %p1103_p2, %p1102_p10 }
 0x4ec   : > { %p1100_p9 = pneg %p1099_p4 }
 0x4ee   : > { %p1105_p12 = pnand %p1104_p11, %p1100_p9 }
 0x4f4   : > { %v660_v16 = vpop.f32.mrf.mxu0 }
 0x4f5   : > { %v664_v17 = vpack.c.bf16 %v660_v16, %v660_v16  ;;  %v591_v24 = vpop.permute.xlu0 %590 }
 0x4f7   : > { %666 = vrot.lane.b32.xlu2 %v664_v17, %s1160_s19 }
 0x4fc   : > { %v662_v18 = vpop.f32.mrf.mxu0 }
 0x551   : > { %v667_v25 = vpop.permute.xlu2 %666 }
 0x557   : > { %v515_v23 = vpop.permute.xlu1 %514 }
 0x558   : > { %518 = vst.msk [vmem:[#allocation2] sm:$0xf] %vm517_vm2, %v515_v23 }
 0x559   : > { %594 = vst.msk [vmem:[#allocation2] sm:$0xf] %vm593_vm3, %v591_v24 }
 0x55a   : > { %670 = vst.msk [vmem:[#allocation2] sm:$0xf] %vm669_vm8, %v667_v25 }
 0x561   : > { %v674_v26 = vld [vmem:[#allocation2] sm:$0xf] }
 0x562   : > { %920 = vmatmul.msk.bf16.vlgmr.msra.gmra.mxu1 %vm708_vm9, %v674_v26 }
 0x5df   : > { %v721_v28 = vpop.f32.mrf.mxu1 }
 0x5e0   : > { %v722_v29 = vadd.f32 %v998_v27, %v721_v28 }
 0x5e2   : > { %v725_v30 = vsel %vm334_vm0, %v722_v29, 0.0 }
 0x5e3   : > { %726 = vadd.xlane.f32.xlu1 %v725_v30 }
 0x5e7   : > { %v723_v31 = vpop.f32.mrf.mxu1 }
 0x656   : > { %v727_v39 = vpop.xlane.xlu1 %726 }
 0x657   : > { %v735_v40 = vmul.f32 %v734_v38, %v727_v39 }
 0x659   : > { %v736_v41 = vsub.f32 %v722_v29, %v735_v40 }
 0x65b   : > { %v737_v42 = vmul.f32 %v736_v41, %v736_v41 }
 0x65d   : > { %v738_v44 = vsel %vm334_vm0, %v737_v42, 0.0 }
 0x65e   : > { %739 = vadd.xlane.f32.xlu0 %v738_v44 }
 0x6d1   : > { %v740_v45 = vpop.xlane.xlu0 %739 }
 0x6d2   : > { %v741_v46 = vmul.f32 %v740_v45, %v734_v38 }
 0x6d4   : > { %v742_v47 = vadd.f32 1e-05, %v741_v46 }
 0x6d6   : > { %1019 = vrsqrt.f32 %v742_v47  ;;  %vm749_vm12 = vweird.f32 %v742_v47 }
 0x6dc   : > { %v1020_v48 = vpop.eup %1019 }
 0x6dd   : > { %v744_v49 = vmul.f32 %v1020_v48, %v742_v47  ;;  %vm750_vm11 = vweird.f32 %v1020_v48 }
 0x6de   : > { %vm751_vm13 = vmor %vm749_vm12, %vm750_vm11 }
 0x6df   : > { %v745_v50 = vmul.f32 %v1020_v48, %v744_v49 }
 0x6e1   : > { %v746_v51 = vmul.f32 0.5, %v745_v50 }
 0x6e3   : > { %v747_v52 = vsub.f32 1.5, %v746_v51 }
 0x6e5   : > { %v748_v53 = vmul.f32 %v1020_v48, %v747_v52 }
 0x6e7   : > { %v752_v55 = vsel %vm751_vm13, %v1020_v48, %v748_v53 }
 0x6e8   : > { %v753_v56 = vmul.f32 %v752_v55, %v736_v41 }
 0x6ea   : > { %v755_v58 = vmul.f32 %v999_v54, %v753_v56 }
 0x6ec   : > { %v757_v59 = vadd.f32 %v1000_v57, %v755_v58 }
 0x6ee   : > { %758 = vst.msk [vmem:[%s296_s25] sm:$0xff] %vm334_vm0, %v757_v59 }
 0x6ef   : > { %1108 = shalt.err (!%p1105_p12)
}
 0x6f0   : > { %939 = dma.vmem_to_hbm [thread:$0]  (%p1263_p3), %s773_s13, 128, %s775_s9, %s760_s18  }
 0x6f1 PF: > { %s786_s16 = sand.u32 1, %s1139_s21   ;;  %p1474_p13 = scmp.ge.s32.totalorder %s1151_s24, 2 }
 0x6f2   : > { %s787_s10 = scalar_lea.sflag [#allocation5], %s786_s16 }
 0x6f3   : > { %p950_p0 = pnand %p1474_p13, %p1232_p6 }
 0x6f5   : > { %p951_p5 = pneg %p950_p0 }
 0x6f7   : > { %1134 = dma.done.wait (%p951_p5), %s787_s10, 128  }
 0x6f8   : > { %1136 = vsyncadd (%p951_p5), %s787_s10, 4294967168  ;;  %p20_p7 = scmp.ge.s32.totalorder %s1250_s11, 4   ;;  %s1475_s21 = smov %s1143_s22 }
 0x6f9   : > { %s1476_s22 = smov %s1147_s23  ;;  %s1477_s23 = smov %s1259_s14 }
 0x6fa   : > { %s1478_s24 = smov %s1250_s11  ;;  %22 = sbr.rel (!%p20_p7) target bundleno = 6 (0x6), region = 96 }
 0x6ff   :  { %793 = vsyncpa [#allocation4], 1 }
 0x700   :  { %795 = vsyncpa [#allocation4 + $0x1], 1 }
 0x701   :  { %796 = vsyncpa [#allocation7], 1 }
 0x702   :  { %797 = vsyncpa [#allocation5], 1 }
 0x703   :  { %799 = vsyncpa [#allocation5 + $0x1], 1 }

</bundles_post_ra>
